<compile_context>
chip_gen: v7x
topology: tpu7x:2x2x1
jax: 0.10.0
libtpu: 0.0.40
codegen_flags: <defaults>
</compile_context>

<pallas_src>
import jax
import jax.numpy as jnp
from jax.experimental import pallas as pl
from jax.experimental.pallas import tpu as pltpu


def _round_up(x, m):
    return (x + m - 1) // m * m


# -----------------------------------------------------------------------------
# Kernel: one batch tile (TB rows) through the whole 3-layer MLP.
# -----------------------------------------------------------------------------
def actor_kernel(x_ref, w1_ref, b1_ref, w2_ref, b2_ref, w3_ref, b3_ref,
                 lim_ref, out_ref):
    # Layer 1: (TB, S) @ (S, H1p) -> f32 accumulate; bias/ReLU in f32.
    h1 = jnp.dot(x_ref[...], w1_ref[...], preferred_element_type=jnp.float32)
    h1 = jnp.maximum(h1 + b1_ref[...], 0.0)

    # Layer 2: (TB, H1p) @ (H1p, H2p); cast activation to MXU operand dtype.
    h2 = jnp.dot(h1.astype(w2_ref.dtype), w2_ref[...],
                 preferred_element_type=jnp.float32)
    h2 = jnp.maximum(h2 + b2_ref[...], 0.0)

    # Layer 3: (TB, H2p) @ (H2p, Ap) -> tanh -> * action_lim.
    # Output is (TB, Ap) with Ap a multiple of 128 -> lane-dense unmasked store.
    h3 = jnp.dot(h2.astype(w3_ref.dtype), w3_ref[...],
                 preferred_element_type=jnp.float32)
    out_ref[...] = (jnp.tanh(h3 + b3_ref[...]) * lim_ref[...]).astype(out_ref.dtype)


# -----------------------------------------------------------------------------
# One-time parameter preparation: lane-align (zero pad) + cast MXU operands.
# -----------------------------------------------------------------------------
def prepare_actor_params(params, action_lim, *, compute_dtype=jnp.bfloat16):
    S, H1 = params["w1"].shape
    H2 = params["w2"].shape[1]
    A = params["w3"].shape[1]
    H1p, H2p, Ap = _round_up(H1, 128), _round_up(H2, 128), _round_up(A, 128)

    # Zero padding is exact: padded h1/h2 columns stay 0 through bias(=0)+ReLU,
    # padded w rows multiply zeros, padded output lanes are sliced off.
    w1 = jnp.pad(params["w1"], ((0, 0), (0, H1p - H1))).astype(compute_dtype)
    w2 = jnp.pad(params["w2"], ((0, H1p - H1), (0, H2p - H2))).astype(compute_dtype)
    w3 = jnp.pad(params["w3"], ((0, H2p - H2), (0, Ap - A))).astype(compute_dtype)
    b1 = jnp.pad(params["b1"].astype(jnp.float32), (0, H1p - H1)).reshape(1, H1p)
    b2 = jnp.pad(params["b2"].astype(jnp.float32), (0, H2p - H2)).reshape(1, H2p)
    b3 = jnp.pad(params["b3"].astype(jnp.float32), (0, Ap - A)).reshape(1, Ap)
    lim = jnp.pad(action_lim.astype(jnp.float32), (0, Ap - A)).reshape(1, Ap)

    return {
        "w1": w1, "b1": b1, "w2": w2, "b2": b2, "w3": w3, "b3": b3, "lim": lim,
        "state_dim": S, "action_dim": A, "compute_dtype": compute_dtype,
    }


# -----------------------------------------------------------------------------
# Forward: batch-tiled, weights resident across grid steps.
# -----------------------------------------------------------------------------
def actor_forward(state, prep, *, block_batch=128):
    B, S = state.shape
    assert S == prep["state_dim"]
    A = prep["action_dim"]
    H1p = prep["w1"].shape[1]
    H2p = prep["w2"].shape[1]
    Ap = prep["w3"].shape[1]
    compute_dtype = prep["compute_dtype"]

    # Batch tile: multiple of 8 sublanes; 128 rows fills the MXU for big batches.
    TB = block_batch if B >= block_batch else _round_up(B, 8)
    B_pad = _round_up(B, TB)

    x = state.astype(compute_dtype)
    if B_pad != B:
        x = jnp.pad(x, ((0, B_pad - B), (0, 0)))

    grid = (pl.cdiv(B_pad, TB),)

    const2d = lambda i: (0, 0)          # weights/biases: same block every step
    batch_map = lambda i: (i, 0)        # state/output: walk the batch tiles

    out = pl.pallas_call(
        actor_kernel,
        out_shape=jax.ShapeDtypeStruct((B_pad, Ap), jnp.float32),
        grid_spec=pltpu.PrefetchScalarGridSpec(
            num_scalar_prefetch=0,
            grid=grid,
            in_specs=[
                pl.BlockSpec((TB, S), batch_map),     # state tile
                pl.BlockSpec((S, H1p), const2d),      # w1 (resident)
                pl.BlockSpec((1, H1p), const2d),      # b1
                pl.BlockSpec((H1p, H2p), const2d),    # w2 (resident)
                pl.BlockSpec((1, H2p), const2d),      # b2
                pl.BlockSpec((H2p, Ap), const2d),     # w3 (resident)
                pl.BlockSpec((1, Ap), const2d),       # b3
                pl.BlockSpec((1, Ap), const2d),       # action_lim
            ],
            out_specs=pl.BlockSpec((TB, Ap), batch_map),
        ),
        compiler_params=pltpu.CompilerParams(
            dimension_semantics=("parallel",)),
    )(x, prep["w1"], prep["b1"], prep["w2"], prep["b2"],
      prep["w3"], prep["b3"], prep["lim"])

    return out[:B, :A]


# -----------------------------------------------------------------------------
# Param init mimicking nn.Linear default U(-1/sqrt(fan_in), 1/sqrt(fan_in)).
# -----------------------------------------------------------------------------
def init_actor_params(key, state_dim, action_dim, h1=400, h2=300):
    ks = jax.random.split(key, 6)

    def linear(kw, kb, fan_in, fan_out):
        bound = 1.0 / jnp.sqrt(jnp.float32(fan_in))
        w = jax.random.uniform(kw, (fan_in, fan_out), jnp.float32, -bound, bound)
        b = jax.random.uniform(kb, (fan_out,), jnp.float32, -bound, bound)
        return w, b

    w1, b1 = linear(ks[0], ks[1], state_dim, h1)
    w2, b2 = linear(ks[2], ks[3], h1, h2)
    w3, b3 = linear(ks[4], ks[5], h2, action_dim)
    return {"w1": w1, "b1": b1, "w2": w2, "b2": b2, "w3": w3, "b3": b3}


def actor_reference(state, params, action_lim):
    h1 = jnp.maximum(state @ params["w1"] + params["b1"], 0.0)
    h2 = jnp.maximum(h1 @ params["w2"] + params["b2"], 0.0)
    return jnp.tanh(h2 @ params["w3"] + params["b3"]) * action_lim


if __name__ == "__main__":
    key = jax.random.PRNGKey(0)
    k_params, k_state_small, k_state_big = jax.random.split(key, 3)

    state_dim = 32
    action_dim = 4
    action_lim = jnp.array([1.0, 2.0, 0.5, 3.0], dtype=jnp.float32)

    params = init_actor_params(k_params, state_dim, action_dim)

    # --- small batch, f32 operands: exact parity with the reference ----------
    state_small = jax.random.normal(k_state_small, (2, state_dim), dtype=jnp.float32)
    prep_f32 = prepare_actor_params(params, action_lim, compute_dtype=jnp.float32)
    out_f32 = jax.block_until_ready(actor_forward(state_small, prep_f32))
    ref_small = actor_reference(state_small, params, action_lim)
    assert out_f32.shape == (2, action_dim)
    assert jnp.allclose(out_f32, ref_small, atol=1e-5, rtol=1e-5), "f32 mismatch"

    # --- larger batch, bf16 MXU operands: exercises the tiled parallel grid --
    state_big = jax.random.normal(k_state_big, (256, state_dim), dtype=jnp.float32)
    prep_bf16 = prepare_actor_params(params, action_lim, compute_dtype=jnp.bfloat16)
    out_bf16 = jax.block_until_ready(actor_forward(state_big, prep_bf16))
    ref_big = actor_reference(state_big, params, action_lim)
    assert out_bf16.shape == (256, action_dim)
    assert jnp.allclose(out_bf16, ref_big, atol=5e-2, rtol=5e-2), "bf16 mismatch"

    print("KERNEL_OK")
</pallas_src>

<mosaic_0001>
module attributes {stable_mosaic.version = 11 : i64} {
  func.func @actor_kernel(%arg0: i32, %arg1: memref<8x32xf32, #tpu.memory_space<vmem>>, %arg2: memref<32x512xf32, #tpu.memory_space<vmem>>, %arg3: memref<1x512xf32, #tpu.memory_space<vmem>>, %arg4: memref<512x384xf32, #tpu.memory_space<vmem>>, %arg5: memref<1x384xf32, #tpu.memory_space<vmem>>, %arg6: memref<384x128xf32, #tpu.memory_space<vmem>>, %arg7: memref<1x128xf32, #tpu.memory_space<vmem>>, %arg8: memref<1x128xf32, #tpu.memory_space<vmem>>, %arg9: memref<8x128xf32, #tpu.memory_space<vmem>>) attributes {dimension_semantics = [#tpu.dimension_semantics<parallel>], iteration_bounds = array<i64: 1>, scalar_prefetch = 0 : i64, scratch_operands = 0 : i64, tpu.core_type = #tpu.core_type<tc>, window_params = [{transform_indices = @transform_0, window_bounds = array<i64: 8, 32>}, {pipeline_mode = #tpu.pipeline_mode<synchronous>, transform_indices = @transform_1, window_bounds = array<i64: 32, 512>}, {pipeline_mode = #tpu.pipeline_mode<synchronous>, transform_indices = @transform_2, window_bounds = array<i64: 1, 512>}, {pipeline_mode = #tpu.pipeline_mode<synchronous>, transform_indices = @transform_3, window_bounds = array<i64: 512, 384>}, {pipeline_mode = #tpu.pipeline_mode<synchronous>, transform_indices = @transform_4, window_bounds = array<i64: 1, 384>}, {pipeline_mode = #tpu.pipeline_mode<synchronous>, transform_indices = @transform_5, window_bounds = array<i64: 384, 128>}, {pipeline_mode = #tpu.pipeline_mode<synchronous>, transform_indices = @transform_6, window_bounds = array<i64: 1, 128>}, {pipeline_mode = #tpu.pipeline_mode<synchronous>, transform_indices = @transform_7, window_bounds = array<i64: 1, 128>}, {transform_indices = @transform_8, window_bounds = array<i64: 8, 128>}]} {
    %c0 = arith.constant 0 : index
    %c0_0 = arith.constant 0 : index
    %0 = vector.load %arg1[%c0, %c0_0] : memref<8x32xf32, #tpu.memory_space<vmem>>, vector<8x32xf32>
    %c0_1 = arith.constant 0 : index
    %c0_2 = arith.constant 0 : index
    %1 = vector.load %arg2[%c0_1, %c0_2] : memref<32x512xf32, #tpu.memory_space<vmem>>, vector<32x512xf32>
    %cst = arith.constant dense<0.000000e+00> : vector<8x512xf32>
    %2 = tpu.matmul %0, %1, %cst {dimension_numbers = #tpu.dot_dimension_numbers<[1], [0], [0], [1], [0, 0, 1, 1], [], []>} : vector<8x32xf32>, vector<32x512xf32>, vector<8x512xf32> -> vector<8x512xf32>
    %c0_3 = arith.constant 0 : index
    %c0_4 = arith.constant 0 : index
    %3 = vector.load %arg3[%c0_3, %c0_4] : memref<1x512xf32, #tpu.memory_space<vmem>>, vector<1x512xf32>
    %4 = vector.broadcast %3 : vector<1x512xf32> to vector<8x512xf32>
    %5 = arith.addf %2, %4 : vector<8x512xf32>
    %cst_5 = arith.constant 0.000000e+00 : f32
    %6 = vector.broadcast %cst_5 : f32 to vector<8x512xf32>
    %7 = arith.maximumf %5, %6 : vector<8x512xf32>
    %c0_6 = arith.constant 0 : index
    %c0_7 = arith.constant 0 : index
    %8 = vector.load %arg4[%c0_6, %c0_7] : memref<512x384xf32, #tpu.memory_space<vmem>>, vector<512x384xf32>
    %cst_8 = arith.constant dense<0.000000e+00> : vector<8x384xf32>
    %9 = tpu.matmul %7, %8, %cst_8 {dimension_numbers = #tpu.dot_dimension_numbers<[1], [0], [0], [1], [0, 0, 1, 1], [], []>} : vector<8x512xf32>, vector<512x384xf32>, vector<8x384xf32> -> vector<8x384xf32>
    %c0_9 = arith.constant 0 : index
    %c0_10 = arith.constant 0 : index
    %10 = vector.load %arg5[%c0_9, %c0_10] : memref<1x384xf32, #tpu.memory_space<vmem>>, vector<1x384xf32>
    %11 = vector.broadcast %10 : vector<1x384xf32> to vector<8x384xf32>
    %12 = arith.addf %9, %11 : vector<8x384xf32>
    %cst_11 = arith.constant 0.000000e+00 : f32
    %13 = vector.broadcast %cst_11 : f32 to vector<8x384xf32>
    %14 = arith.maximumf %12, %13 : vector<8x384xf32>
    %c0_12 = arith.constant 0 : index
    %c0_13 = arith.constant 0 : index
    %15 = vector.load %arg6[%c0_12, %c0_13] : memref<384x128xf32, #tpu.memory_space<vmem>>, vector<384x128xf32>
    %cst_14 = arith.constant dense<0.000000e+00> : vector<8x128xf32>
    %16 = tpu.matmul %14, %15, %cst_14 {dimension_numbers = #tpu.dot_dimension_numbers<[1], [0], [0], [1], [0, 0, 1, 1], [], []>} : vector<8x384xf32>, vector<384x128xf32>, vector<8x128xf32> -> vector<8x128xf32>
    %c0_15 = arith.constant 0 : index
    %c0_16 = arith.constant 0 : index
    %17 = vector.load %arg7[%c0_15, %c0_16] : memref<1x128xf32, #tpu.memory_space<vmem>>, vector<1x128xf32>
    %18 = vector.broadcast %17 : vector<1x128xf32> to vector<8x128xf32>
    %19 = arith.addf %16, %18 : vector<8x128xf32>
    %20 = math.tanh %19 : vector<8x128xf32>
    %c0_17 = arith.constant 0 : index
    %c0_18 = arith.constant 0 : index
    %21 = vector.load %arg8[%c0_17, %c0_18] : memref<1x128xf32, #tpu.memory_space<vmem>>, vector<1x128xf32>
    %22 = vector.broadcast %21 : vector<1x128xf32> to vector<8x128xf32>
    %23 = arith.mulf %20, %22 : vector<8x128xf32>
    %c0_19 = arith.constant 0 : index
    %c0_20 = arith.constant 0 : index
    %24 = vector.load %arg9[%c0_19, %c0_20] : memref<8x128xf32, #tpu.memory_space<vmem>>, vector<8x128xf32>
    tpu.vector_store %arg9[%c0_19, %c0_20], %23 {strides = array<i32>} : memref<8x128xf32, #tpu.memory_space<vmem>>, vector<8x128xf32>,
    return
  }
  func.func @transform_0(%arg0: i32) -> (i32, i32) {
    %c0_i32 = arith.constant 0 : i32
    %c0_i32_0 = arith.constant 0 : i32
    return %arg0, %c0_i32 : i32, i32
  }
  func.func @transform_1(%arg0: i32) -> (i32, i32) {
    %c0_i32 = arith.constant 0 : i32
    %c0_i32_0 = arith.constant 0 : i32
    %c0_i32_1 = arith.constant 0 : i32
    return %c0_i32, %c0_i32_0 : i32, i32
  }
  func.func @transform_2(%arg0: i32) -> (i32, i32) {
    %c0_i32 = arith.constant 0 : i32
    %c0_i32_0 = arith.constant 0 : i32
    %c0_i32_1 = arith.constant 0 : i32
    return %c0_i32, %c0_i32_0 : i32, i32
  }
  func.func @transform_3(%arg0: i32) -> (i32, i32) {
    %c0_i32 = arith.constant 0 : i32
    %c0_i32_0 = arith.constant 0 : i32
    %c0_i32_1 = arith.constant 0 : i32
    return %c0_i32, %c0_i32_0 : i32, i32
  }
  func.func @transform_4(%arg0: i32) -> (i32, i32) {
    %c0_i32 = arith.constant 0 : i32
    %c0_i32_0 = arith.constant 0 : i32
    %c0_i32_1 = arith.constant 0 : i32
    return %c0_i32, %c0_i32_0 : i32, i32
  }
  func.func @transform_5(%arg0: i32) -> (i32, i32) {
    %c0_i32 = arith.constant 0 : i32
    %c0_i32_0 = arith.constant 0 : i32
    %c0_i32_1 = arith.constant 0 : i32
    return %c0_i32, %c0_i32_0 : i32, i32
  }
  func.func @transform_6(%arg0: i32) -> (i32, i32) {
    %c0_i32 = arith.constant 0 : i32
    %c0_i32_0 = arith.constant 0 : i32
    %c0_i32_1 = arith.constant 0 : i32
    return %c0_i32, %c0_i32_0 : i32, i32
  }
  func.func @transform_7(%arg0: i32) -> (i32, i32) {
    %c0_i32 = arith.constant 0 : i32
    %c0_i32_0 = arith.constant 0 : i32
    %c0_i32_1 = arith.constant 0 : i32
    return %c0_i32, %c0_i32_0 : i32, i32
  }
  func.func @transform_8(%arg0: i32) -> (i32, i32) {
    %c0_i32 = arith.constant 0 : i32
    %c0_i32_0 = arith.constant 0 : i32
    return %arg0, %c0_i32 : i32, i32
  }
}

</mosaic_0001>

<bundles_post_ra>
// kernel: tpu_custom_call.1
= control target key start
LH: loop header
LB: loop body
LE: loop exit
PB: predicated region body
PF: predicated region fallthrough
CT: control target
= control target key end

     0   :  { %13 = vsyncpa [#allocation3], 0  ;;  %s1717_s0 = inlined_call_operand.hbm [shape: f32[8,32], index: 0, kind: input, shape index: {}]   ;;  %s1718_s1 = inlined_call_operand.hbm [shape: f32[32,512], index: 1, kind: input, shape index: {}]   ;;  %s1719_s2 = inlined_call_operand.vmem [shape: f32[1,512], index: 2, kind: input, shape index: {}]   ;;  %s1720_s3 = inlined_call_operand.hbm [shape: f32[512,384], index: 3, kind: input, shape index: {}]   ;;  %s1721_s4 = inlined_call_operand.vmem [shape: f32[1,384], index: 4, kind: input, shape index: {}]   ;;  %s1722_s5 = inlined_call_operand.hbm [shape: f32[384,128], index: 5, kind: input, shape index: {}]   ;;  %s1723_s6 = inlined_call_operand.vmem [shape: f32[1,128], index: 6, kind: input, shape index: {}]   ;;  %s1724_s7 = inlined_call_operand.vmem [shape: f32[1,128], index: 7, kind: input, shape index: {}]   ;;  %s1725_s8 = inlined_call_operand.hbm [shape: f32[8,128], index: 8, kind: output, shape index: {}]  }
   0x1   :  { %14 = vsyncpa [#allocation6], 0 }
   0x2   :  { %15 = vsyncpa [#allocation9], 0 }
   0x3   :  { %16 = vsyncpa [#allocation4], 0  ;;  %s1551_s27 = smov [#allocation5]   ;;  %s1433_s9 = scalar_lea.hbm %s1718_s1, 2048 }
   0x4   :  { %s32_s28 = sshll.u32 %s1551_s27, 4  ;;  %p1434_p0 = scmp.ne.s32.totalorder %s1718_s1, %s1433_s9  ;;  %s33_s28 = int_to_ptr.vmem [resolvable:$true] %s32_s28 }
   0x5   :  { %p1437_p1 = scmp.lt.u32.totalorder %s1433_s9, %s1718_s1 }
   0x7   :  { %p1439_p2 = pnand %p1437_p1, %p1434_p0 }
   0x9   :  { %1442 = shalt.err (!%p1439_p2)
}
   0xa   :  { %s1443_s14 = scalar_lea.vmem %s33_s28, 2048  ;;  %p1448_p4 = scmp.lt.s32.totalorder %s33_s28, %s33_s28 }
   0xb   :  { %p1444_p3 = scmp.ne.s32.totalorder %s33_s28, %s1443_s14  ;;  %p1449_p5 = scmp.lt.s32.totalorder %s1443_s14, %s1443_s14 }
   0xd   :  { %p1450_p6 = por %p1449_p5, %p1448_p4 }
   0xf   :  { %p1451_p7 = pnand %p1450_p6, %p1444_p3 }
  0x11   :  { %1454 = shalt.err (!%p1451_p7)
}
  0x12   :  { %s1552_s15 = smov 512   ;;  %s1553_s16 = smov 32  }
  0x13   :  { %38 = dma.hbm_to_vmem [thread:$0]  %s1718_s1, 2048, %s33_s28, [#allocation6], %s1552_s15, %s1552_s15, %s1553_s16  }
  0x14   :  { %s1554_s19 = smov [#allocation2]   ;;  %s1555_s21 = smov [#allocation7]  }
  0x15   :  { %s23_s20 = sshll.u32 %s1554_s19, 4  ;;  %s46_s22 = sshll.u32 %s1555_s21, 4  ;;  %s24_s20 = int_to_ptr.vmem [resolvable:$true] %s23_s20  ;;  %s47_s22 = int_to_ptr.vmem [resolvable:$true] %s46_s22 }
  0x16   :  { %s1455_s25 = scalar_lea.hbm %s1717_s0, 128 }
  0x17   :  { %p1456_p8 = scmp.ne.s32.totalorder %s1717_s0, %s1455_s25  ;;  %p1459_p9 = scmp.lt.u32.totalorder %s1455_s25, %s1717_s0 }
  0x19   :  { %p1461_p10 = pnand %p1459_p9, %p1456_p8 }
  0x1b   :  { %1464 = shalt.err (!%p1461_p10)
}
  0x1c   :  { %s1465_s1 = scalar_lea.vmem %s24_s20, 128  ;;  %p1470_p12 = scmp.lt.s32.totalorder %s24_s20, %s24_s20 }
  0x1d   :  { %p1466_p11 = scmp.ne.s32.totalorder %s24_s20, %s1465_s1  ;;  %p1471_p13 = scmp.lt.s32.totalorder %s1465_s1, %s1465_s1 }
  0x1f   :  { %p1472_p0 = por %p1471_p13, %p1470_p12 }
  0x21   :  { %p1473_p1 = pnand %p1472_p0, %p1466_p11 }
  0x23   :  { %1476 = shalt.err (!%p1473_p1)
}
  0x24   :  { %26 = dma.hbm_to_vmem [thread:$0]  %s1717_s0, 128, %s24_s20, [#allocation3]  }
  0x25   :  { %s1477_s12 = scalar_lea.hbm %s1720_s3, 24576 }
  0x26   :  { %p1478_p2 = scmp.ne.s32.totalorder %s1720_s3, %s1477_s12  ;;  %p1481_p3 = scmp.lt.u32.totalorder %s1477_s12, %s1720_s3 }
  0x28   :  { %p1483_p4 = pnand %p1481_p3, %p1478_p2 }
  0x2a   :  { %1486 = shalt.err (!%p1483_p4)
}
  0x2b   :  { %s1487_s17 = scalar_lea.vmem %s47_s22, 24576  ;;  %p1492_p6 = scmp.lt.s32.totalorder %s47_s22, %s47_s22 }
  0x2c   :  { %p1488_p5 = scmp.ne.s32.totalorder %s47_s22, %s1487_s17  ;;  %p1493_p7 = scmp.lt.s32.totalorder %s1487_s17, %s1487_s17 }
  0x2e   :  { %p1494_p8 = por %p1493_p7, %p1492_p6 }
  0x30   :  { %p1495_p9 = pnand %p1494_p8, %p1488_p5 }
  0x32   :  { %1498 = shalt.err (!%p1495_p9)
}
  0x33   :  { %s1556_s0 = smov 384   ;;  %s1557_s18 = smov 24  }
  0x34   :  { %52 = dma.hbm_to_vmem [thread:$0]  %s1720_s3, 24576, %s47_s22, [#allocation6], %s1556_s0, %s1556_s0, %s1557_s18  }
  0x35   :  { %s1558_s21 = smov [#allocation8]   ;;  %s1499_s26 = scalar_lea.hbm %s1722_s5, 6144 }
  0x36   :  { %s60_s23 = sshll.u32 %s1558_s21, 4  ;;  %p1500_p10 = scmp.ne.s32.totalorder %s1722_s5, %s1499_s26  ;;  %s61_s23 = int_to_ptr.vmem [resolvable:$true] %s60_s23 }
  0x37   :  { %p1503_p11 = scmp.lt.u32.totalorder %s1499_s26, %s1722_s5 }
  0x39   :  { %p1505_p12 = pnand %p1503_p11, %p1500_p10 }
  0x3b   :  { %1508 = shalt.err (!%p1505_p12)
}
  0x3c   :  { %s1509_s28 = scalar_lea.vmem %s61_s23, 6144  ;;  %p1514_p0 = scmp.lt.s32.totalorder %s61_s23, %s61_s23 }
  0x3d   :  { %p1510_p13 = scmp.ne.s32.totalorder %s61_s23, %s1509_s28  ;;  %p1515_p1 = scmp.lt.s32.totalorder %s1509_s28, %s1509_s28 }
  0x3f   :  { %p1516_p2 = por %p1515_p1, %p1514_p0 }
  0x41   :  { %p1517_p3 = pnand %p1516_p2, %p1510_p13 }
  0x43   :  { %1520 = shalt.err (!%p1517_p3)
}
  0x44   :  { %s1559_s3 = smov 128   ;;  %s1560_s22 = smov 8  }
  0x45   :  { %66 = dma.hbm_to_vmem [thread:$0]  %s1722_s5, 6144, %s61_s23, [#allocation9], %s1559_s3, %s1559_s3, %s1560_s22  }
  0x46   :  { %1543 = dma.done.wait [#allocation3], 128  }
  0x47   :  { %1544 = vsyncadd [#allocation3], 4294967168 }
  0x48   :  { %1545 = dma.done.wait [#allocation6], 26624  }
  0x49   :  { %1546 = vsyncadd [#allocation6], 4294940672 }
  0x4a   :  { %1547 = dma.done.wait [#allocation9], 6144  }
  0x4b   :  { %1548 = vsyncadd [#allocation9], 4294961152  ;;  %v1561_v0 = vmov 0.0   ;;  %v85_v1 = vld [vmem:[#allocation5 + $0x8] sm:$0xff]  ;;  %v84_v3 = vld [vmem:[#allocation5] sm:$0xff]  ;;  %vm122_vm0 = vcmask 261120  }
  0x4c   :  { %190 = vmatprep.mubr.f32.mxu0 %v1561_v0  ;;  %261 = vmatprep.mubr.f32.mxu1 %v1561_v0  ;;  %v89_v2 = vld [vmem:[#allocation5 + $0x28] sm:$0xff]  ;;  %v88_v5 = vld [vmem:[#allocation5 + $0x20] sm:$0xff]  ;;  %v87_v12 = vld [vmem:[#allocation5 + $0x18] sm:$0xff]  ;;  %vm1563_vm1 = vmmov 0   ;;  %s1564_s16 = smov [#allocation10]  }
  0x4d   :  { %v1149_v4 = vpack.c.bf16 %v89_v2, %v85_v1  ;;  %v93_v6 = vld [vmem:[#allocation5 + $0x48] sm:$0xff]  ;;  %v1151_v8 = vpack.c.bf16 %v88_v5, %v84_v3  ;;  %v92_v10 = vld [vmem:[#allocation5 + $0x40] sm:$0xff]  ;;  %v91_v13 = vld [vmem:[#allocation5 + $0x38] sm:$0xff]  ;;  %s977_s17 = sshll.u32 %s1564_s16, 4  ;;  %s978_s17 = int_to_ptr.vmem [resolvable:$true] %s977_s17 }
  0x4e   :  { %v97_v7 = vld [vmem:[#allocation5 + $0x68] sm:$0xff]  ;;  %v96_v11 = vld [vmem:[#allocation5 + $0x60] sm:$0xff]  ;;  %v86_v14 = vld [vmem:[#allocation5 + $0x10] sm:$0xff]  ;;  %v1157_v16 = vpack.c.bf16 %v91_v13, %v87_v12  ;;  %s1521_s0 = scalar_lea.vmem %s978_s17, 128  ;;  %p1526_p5 = scmp.lt.s32.totalorder %s978_s17, %s978_s17 }
  0x4f   :  { %v1153_v9 = vpack.c.bf16 %v97_v7, %v93_v6  ;;  %1150 = vmatprep.subr.bf16.mxu0 %v1149_v4  ;;  %v1155_v15 = vpack.c.bf16 %v96_v11, %v92_v10  ;;  %v90_v17 = vld [vmem:[#allocation5 + $0x30] sm:$0xff]  ;;  %v95_v18 = vld [vmem:[#allocation5 + $0x58] sm:$0xff]  ;;  %v273_v24 = vld [vmem:[#allocation7 + $0x8] sm:$0xff]  ;;  %p1522_p4 = scmp.ne.s32.totalorder %s978_s17, %s1521_s0  ;;  %p1527_p6 = scmp.lt.s32.totalorder %s1521_s0, %s1521_s0 }
  0x50   :  { %1152 = vmatpush1.bf16.msra.mxu0 %v1151_v8  ;;  %v99_v19 = vld [vmem:[#allocation5 + $0x78] sm:$0xff]  ;;  %v1159_v20 = vpack.c.bf16 %v90_v17, %v86_v14  ;;  %v94_v22 = vld [vmem:[#allocation5 + $0x50] sm:$0xff]  ;;  %1158 = vmatprep.subr.bf16.mxu1 %v1157_v16  ;;  %v276_v25 = vld [vmem:[#allocation7 + $0x20] sm:$0xff] }
  0x51   :  { %1154 = vmatprep.subr.bf16.mxu0 %v1153_v9  ;;  %v1161_v21 = vpack.c.bf16 %v99_v19, %v95_v18  ;;  %v98_v23 = vld [vmem:[#allocation5 + $0x70] sm:$0xff]  ;;  %v272_v26 = vld [vmem:[#allocation7] sm:$0xff]  ;;  %v275_v27 = vld [vmem:[#allocation7 + $0x18] sm:$0xff]  ;;  %v1165_v29 = vpack.c.bf16 %v276_v25, %v273_v24  ;;  %p1528_p7 = por %p1527_p6, %p1526_p5 }
  0x52   :  { %1160 = vmatpush1.bf16.msra.mxu1 %v1159_v20  ;;  %v1163_v28 = vpack.c.bf16 %v98_v23, %v94_v22  ;;  %v279_v30 = vld [vmem:[#allocation7 + $0x38] sm:$0xff]  ;;  %v282_v31 = vld [vmem:[#allocation7 + $0x50] sm:$0xff]  ;;  %v1167_v33 = vpack.c.bf16 %v275_v27, %v272_v26  ;;  %v281_v36 = vld [vmem:[#allocation7 + $0x48] sm:$0xff] }
  0x53   :  { %v83_v32 = vld [vmem:[#allocation2] sm:$0xff]  ;;  %1162 = vmatprep.subr.bf16.mxu1 %v1161_v21  ;;  %v1169_v34 = vpack.c.bf16 %v282_v31, %v279_v30  ;;  %v278_v35 = vld [vmem:[#allocation7 + $0x30] sm:$0xff]  ;;  %v285_v37 = vld [vmem:[#allocation7 + $0x68] sm:$0xff]  ;;  %p1529_p8 = pnand %p1528_p7, %p1522_p4 }
  0x54   :  { %1156 = vmatpush1.bf16.msra.mxu0 %v1155_v15  ;;  %v288_v38 = vld [vmem:[#allocation7 + $0x80] sm:$0xff]  ;;  %v1171_v39 = vpack.c.bf16 %v281_v36, %v278_v35  ;;  %v287_v42 = vld [vmem:[#allocation7 + $0x78] sm:$0xff]  ;;  %v294_v44 = vld [vmem:[#allocation7 + $0xb0] sm:$0xff] }
  0x55   :  { %1166 = vmatprep.subr.bf16.mxu0 %v1165_v29  ;;  %v1173_v40 = vpack.c.bf16 %v288_v38, %v285_v37  ;;  %v284_v41 = vld [vmem:[#allocation7 + $0x60] sm:$0xff]  ;;  %v291_v43 = vld [vmem:[#allocation7 + $0x98] sm:$0xff]  ;;  %v290_v46 = vld [vmem:[#allocation7 + $0x90] sm:$0xff] }
  0x56   :  { %1164 = vmatpush1.bf16.msra.mxu1 %v1163_v28  ;;  %v1175_v45 = vpack.c.bf16 %v287_v42, %v284_v41  ;;  %v293_v47 = vld [vmem:[#allocation7 + $0xa8] sm:$0xff]  ;;  %v1177_v48 = vpack.c.bf16 %v294_v44, %v291_v43  ;;  %v322_v50 = vld [vmem:[#allocation7 + $0x190] sm:$0xff]  ;;  %v300_v52 = vld [vmem:[#allocation7 + $0xe0] sm:$0xff] }
  0x57   :  { %988 = vmatmul.mubr.msk.f32.vlgmr.msra.gmra.mrb[0].mxu0 %vm122_vm0, %v83_v32  ;;  %v297_v49 = vld [vmem:[#allocation7 + $0xc8] sm:$0xff]  ;;  %v274_v54 = vld [vmem:[#allocation7 + $0x10] sm:$0xff]  ;;  %v328_v57 = vld [vmem:[#allocation7 + $0x1c0] sm:$0xff]  ;;  %v1179_v58 = vpack.c.bf16 %v293_v47, %v290_v46 }
  0x58   :  { %1168 = vmatpush1.bf16.msra.mxu0 %v1167_v33  ;;  %v325_v51 = vld [vmem:[#allocation7 + $0x1a8] sm:$0xff]  ;;  %v296_v59 = vld [vmem:[#allocation7 + $0xc0] sm:$0xff]  ;;  %v299_v60 = vld [vmem:[#allocation7 + $0xd8] sm:$0xff]  ;;  %v1181_v62 = vpack.c.bf16 %v300_v52, %v297_v49 }
  0x59   :  { %1170 = vmatprep.subr.bf16.mxu0 %v1169_v34  ;;  %989 = vmatmul.mubr.msk.f32.vlgmr.msra.gmra.mrb[0].mxu1 %vm122_vm0, %v83_v32  ;;  %v1293_v53 = vpack.c.bf16 %v325_v51, %v322_v50  ;;  %v277_v55 = vld [vmem:[#allocation7 + $0x28] sm:$0xff]  ;;  %v331_v61 = vld [vmem:[#allocation7 + $0x1d8] sm:$0xff]  ;;  %v280_v2 = vld [vmem:[#allocation7 + $0x40] sm:$0xff]  ;;  %v1183_v10 = vpack.c.bf16 %v299_v60, %v296_v59 }
  0x5a   :  { %v1295_v56 = vpack.c.bf16 %v277_v55, %v274_v54  ;;  %v303_v63 = vld [vmem:[#allocation7 + $0xf8] sm:$0xff]  ;;  %v1297_v1 = vpack.c.bf16 %v331_v61, %v328_v57  ;;  %v306_v4 = vld [vmem:[#allocation7 + $0x110] sm:$0xff]  ;;  %v337_v7 = vld [vmem:[#allocation7 + $0x208] sm:$0xff] }
  0x5b   :  { %1294 = vmatprep.subr.bf16.mxu1 %v1293_v53  ;;  %v283_v3 = vld [vmem:[#allocation7 + $0x58] sm:$0xff]  ;;  %v334_v6 = vld [vmem:[#allocation7 + $0x1f0] sm:$0xff]  ;;  %v305_v12 = vld [vmem:[#allocation7 + $0x108] sm:$0xff]  ;;  %v1185_v14 = vpack.c.bf16 %v306_v4, %v303_v63 }
  0x5c   :  { %1172 = vmatpush1.bf16.msra.mxu0 %v1171_v39  ;;  %1296 = vmatpush3.bf16.msra.mxu1 %v1295_v56  ;;  %v1299_v5 = vpack.c.bf16 %v283_v3, %v280_v2  ;;  %v1301_v8 = vpack.c.bf16 %v337_v7, %v334_v6  ;;  %v286_v9 = vld [vmem:[#allocation7 + $0x70] sm:$0xff]  ;;  %v289_v13 = vld [vmem:[#allocation7 + $0x88] sm:$0xff]  ;;  %v340_v17 = vld [vmem:[#allocation7 + $0x220] sm:$0xff] }
  0x5d   :  { %1174 = vmatprep.subr.bf16.mxu0 %v1173_v40  ;;  %1298 = vmatprep.subr.bf16.mxu1 %v1297_v1  ;;  %v302_v11 = vld [vmem:[#allocation7 + $0xf0] sm:$0xff]  ;;  %v309_v15 = vld [vmem:[#allocation7 + $0x128] sm:$0xff]  ;;  %v1303_v16 = vpack.c.bf16 %v289_v13, %v286_v9  ;;  %v343_v18 = vld [vmem:[#allocation7 + $0x238] sm:$0xff] }
  0x5e   :  { %v312_v19 = vld [vmem:[#allocation7 + $0x140] sm:$0xff]  ;;  %v1305_v20 = vpack.c.bf16 %v343_v18, %v340_v17  ;;  %v295_v22 = vld [vmem:[#allocation7 + $0xb8] sm:$0xff]  ;;  %v346_v23 = vld [vmem:[#allocation7 + $0x250] sm:$0xff]  ;;  %v1187_v24 = vpack.c.bf16 %v305_v12, %v302_v11 }
  0x5f   :  { %v292_v21 = vld [vmem:[#allocation7 + $0xa0] sm:$0xff]  ;;  %v349_v25 = vld [vmem:[#allocation7 + $0x268] sm:$0xff]  ;;  %v1189_v26 = vpack.c.bf16 %v312_v19, %v309_v15  ;;  %v311_v28 = vld [vmem:[#allocation7 + $0x138] sm:$0xff] }
  0x60   :  { %1176 = vmatpush1.bf16.msra.mxu0 %v1175_v45  ;;  %1300 = vmatpush3.bf16.msra.mxu1 %v1299_v5  ;;  %v308_v27 = vld [vmem:[#allocation7 + $0x120] sm:$0xff]  ;;  %v315_v29 = vld [vmem:[#allocation7 + $0x158] sm:$0xff]  ;;  %v1307_v30 = vpack.c.bf16 %v295_v22, %v292_v21  ;;  %v318_v31 = vld [vmem:[#allocation7 + $0x170] sm:$0xff]  ;;  %v1309_v32 = vpack.c.bf16 %v349_v25, %v346_v23 }
  0x61   :  { %1178 = vmatprep.subr.bf16.mxu0 %v1177_v48  ;;  %1302 = vmatprep.subr.bf16.mxu1 %v1301_v8  ;;  %v298_v33 = vld [vmem:[#allocation7 + $0xd0] sm:$0xff]  ;;  %v301_v34 = vld [vmem:[#allocation7 + $0xe8] sm:$0xff]  ;;  %v352_v35 = vld [vmem:[#allocation7 + $0x280] sm:$0xff]  ;;  %v1191_v37 = vpack.c.bf16 %v311_v28, %v308_v27  ;;  %v1193_v38 = vpack.c.bf16 %v318_v31, %v315_v29 }
  0x62   :  { %v355_v36 = vld [vmem:[#allocation7 + $0x298] sm:$0xff]  ;;  %v314_v39 = vld [vmem:[#allocation7 + $0x150] sm:$0xff]  ;;  %v317_v40 = vld [vmem:[#allocation7 + $0x168] sm:$0xff]  ;;  %v1311_v42 = vpack.c.bf16 %v301_v34, %v298_v33 }
  0x63   :  { %v321_v41 = vld [vmem:[#allocation7 + $0x188] sm:$0xff]  ;;  %v324_v43 = vld [vmem:[#allocation7 + $0x1a0] sm:$0xff]  ;;  %v1313_v44 = vpack.c.bf16 %v355_v36, %v352_v35  ;;  %v307_v46 = vld [vmem:[#allocation7 + $0x118] sm:$0xff]  ;;  %v1195_v49 = vpack.c.bf16 %v317_v40, %v314_v39 }
  0x64   :  { %1180 = vmatpush1.bf16.msra.mxu0 %v1179_v58  ;;  %1304 = vmatpush3.bf16.msra.mxu1 %v1303_v16  ;;  %v304_v45 = vld [vmem:[#allocation7 + $0x100] sm:$0xff]  ;;  %v358_v47 = vld [vmem:[#allocation7 + $0x2b0] sm:$0xff]  ;;  %v361_v48 = vld [vmem:[#allocation7 + $0x2c8] sm:$0xff]  ;;  %v1197_v50 = vpack.c.bf16 %v324_v43, %v321_v41 }
  0x65   :  { %1182 = vmatprep.subr.bf16.mxu0 %v1181_v62  ;;  %1306 = vmatprep.subr.bf16.mxu1 %v1305_v20  ;;  %v320_v51 = vld [vmem:[#allocation7 + $0x180] sm:$0xff]  ;;  %v323_v52 = vld [vmem:[#allocation7 + $0x198] sm:$0xff]  ;;  %v1315_v54 = vpack.c.bf16 %v307_v46, %v304_v45  ;;  %v330_v55 = vld [vmem:[#allocation7 + $0x1d0] sm:$0xff]  ;;  %v1317_v56 = vpack.c.bf16 %v361_v48, %v358_v47 }
  0x66   :  { %v327_v53 = vld [vmem:[#allocation7 + $0x1b8] sm:$0xff]  ;;  %v310_v57 = vld [vmem:[#allocation7 + $0x130] sm:$0xff]  ;;  %v313_v58 = vld [vmem:[#allocation7 + $0x148] sm:$0xff]  ;;  %v1199_v59 = vpack.c.bf16 %v323_v52, %v320_v51 }
  0x67   :  { %v1201_v60 = vpack.c.bf16 %v330_v55, %v327_v53  ;;  %v326_v61 = vld [vmem:[#allocation7 + $0x1b0] sm:$0xff]  ;;  %v329_v62 = vld [vmem:[#allocation7 + $0x1c8] sm:$0xff]  ;;  %v1319_v63 = vpack.c.bf16 %v313_v58, %v310_v57  ;;  %v336_v2 = vld [vmem:[#allocation7 + $0x200] sm:$0xff] }
  0x68   :  { %1184 = vmatpush1.bf16.msra.mxu0 %v1183_v10  ;;  %1308 = vmatpush3.bf16.msra.mxu1 %v1307_v30  ;;  %v333_v1 = vld [vmem:[#allocation7 + $0x1e8] sm:$0xff]  ;;  %v1203_v3 = vpack.c.bf16 %v329_v62, %v326_v61  ;;  %v332_v5 = vld [vmem:[#allocation7 + $0x1e0] sm:$0xff]  ;;  %v335_v6 = vld [vmem:[#allocation7 + $0x1f8] sm:$0xff] }
  0x69   :  { %1186 = vmatprep.subr.bf16.mxu0 %v1185_v14  ;;  %1310 = vmatprep.subr.bf16.mxu1 %v1309_v32  ;;  %v1205_v4 = vpack.c.bf16 %v336_v2, %v333_v1  ;;  %v339_v7 = vld [vmem:[#allocation7 + $0x218] sm:$0xff]  ;;  %v342_v8 = vld [vmem:[#allocation7 + $0x230] sm:$0xff]  ;;  %v1207_v9 = vpack.c.bf16 %v335_v6, %v332_v5  ;;  %v341_v12 = vld [vmem:[#allocation7 + $0x228] sm:$0xff] }
  0x6a   :  { %v1209_v10 = vpack.c.bf16 %v342_v8, %v339_v7  ;;  %v338_v11 = vld [vmem:[#allocation7 + $0x210] sm:$0xff]  ;;  %v345_v13 = vld [vmem:[#allocation7 + $0x248] sm:$0xff]  ;;  %v348_v14 = vld [vmem:[#allocation7 + $0x260] sm:$0xff] }
  0x6b   :  { %v1211_v15 = vpack.c.bf16 %v341_v12, %v338_v11  ;;  %v1213_v16 = vpack.c.bf16 %v348_v14, %v345_v13  ;;  %v344_v17 = vld [vmem:[#allocation7 + $0x240] sm:$0xff]  ;;  %v347_v18 = vld [vmem:[#allocation7 + $0x258] sm:$0xff]  ;;  %v354_v20 = vld [vmem:[#allocation7 + $0x290] sm:$0xff] }
  0x6c   :  { %1188 = vmatpush1.bf16.msra.mxu0 %v1187_v24  ;;  %1312 = vmatpush3.bf16.msra.mxu1 %v1311_v42  ;;  %v351_v19 = vld [vmem:[#allocation7 + $0x278] sm:$0xff]  ;;  %v1215_v21 = vpack.c.bf16 %v347_v18, %v344_v17  ;;  %v350_v23 = vld [vmem:[#allocation7 + $0x270] sm:$0xff]  ;;  %v353_v24 = vld [vmem:[#allocation7 + $0x288] sm:$0xff] }
  0x6d   :  { %1190 = vmatprep.subr.bf16.mxu0 %v1189_v26  ;;  %1314 = vmatprep.subr.bf16.mxu1 %v1313_v44  ;;  %v1217_v22 = vpack.c.bf16 %v354_v20, %v351_v19  ;;  %v357_v25 = vld [vmem:[#allocation7 + $0x2a8] sm:$0xff]  ;;  %v360_v26 = vld [vmem:[#allocation7 + $0x2c0] sm:$0xff]  ;;  %v1219_v27 = vpack.c.bf16 %v353_v24, %v350_v23  ;;  %v359_v30 = vld [vmem:[#allocation7 + $0x2b8] sm:$0xff] }
  0x6e   :  { %v1221_v28 = vpack.c.bf16 %v360_v26, %v357_v25  ;;  %v356_v29 = vld [vmem:[#allocation7 + $0x2a0] sm:$0xff]  ;;  %v363_v32 = vld [vmem:[#allocation7 + $0x2d8] sm:$0xff]  ;;  %v366_v33 = vld [vmem:[#allocation7 + $0x2f0] sm:$0xff] }
  0x6f   :  { %v1223_v31 = vpack.c.bf16 %v359_v30, %v356_v29  ;;  %v364_v34 = vld [vmem:[#allocation7 + $0x2e0] sm:$0xff]  ;;  %v1225_v35 = vpack.c.bf16 %v366_v33, %v363_v32  ;;  %v367_v36 = vld [vmem:[#allocation7 + $0x2f8] sm:$0xff]  ;;  %v369_v44 = vld [vmem:[#allocation7 + $0x308] sm:$0xff] }
  0x70   :  { %1192 = vmatpush1.bf16.msra.mxu0 %v1191_v37  ;;  %1316 = vmatpush3.bf16.msra.mxu1 %v1315_v54  ;;  %v362_v37 = vld [vmem:[#allocation7 + $0x2d0] sm:$0xff]  ;;  %v1321_v39 = vpack.c.bf16 %v367_v36, %v364_v34  ;;  %v316_v41 = vld [vmem:[#allocation7 + $0x160] sm:$0xff]  ;;  %v319_v42 = vld [vmem:[#allocation7 + $0x178] sm:$0xff] }
  0x71   :  { %1194 = vmatprep.subr.bf16.mxu0 %v1193_v38  ;;  %1318 = vmatprep.subr.bf16.mxu1 %v1317_v56  ;;  %v365_v38 = vld [vmem:[#allocation7 + $0x2e8] sm:$0xff]  ;;  %v1323_v43 = vpack.c.bf16 %v319_v42, %v316_v41  ;;  %v372_v45 = vld [vmem:[#allocation7 + $0x320] sm:$0xff]  ;;  %v418_v46 = vld [vmem:[#allocation7 + $0x490] sm:$0xff] }
  0x72   :  { %v1227_v40 = vpack.c.bf16 %v365_v38, %v362_v37  ;;  %v1229_v47 = vpack.c.bf16 %v372_v45, %v369_v44  ;;  %v421_v48 = vld [vmem:[#allocation7 + $0x4a8] sm:$0xff]  ;;  %v1668_v53 = vld [vmem:[%s1719_s2] sm:$0xf]  ;;  %v378_v5 = vld [vmem:[#allocation7 + $0x350] sm:$0xff] }
  0x73   :  { %v373_v1 = vld [vmem:[#allocation7 + $0x328] sm:$0xff]  ;;  %v375_v2 = vld [vmem:[#allocation7 + $0x338] sm:$0xff]  ;;  %v424_v6 = vld [vmem:[#allocation7 + $0x4c0] sm:$0xff] }
  0x74   :  { %1196 = vmatpush1.bf16.msra.mxu0 %v1195_v49  ;;  %1320 = vmatpush3.bf16.msra.mxu1 %v1319_v63  ;;  %v1325_v49 = vpack.c.bf16 %v421_v48, %v418_v46  ;;  %v370_v63 = vld [vmem:[#allocation7 + $0x310] sm:$0xff]  ;;  %v427_v7 = vld [vmem:[#allocation7 + $0x4d8] sm:$0xff]  ;;  %v377_v13 = vld [vmem:[#allocation7 + $0x348] sm:$0xff] }
  0x75   :  { %1198 = vmatprep.subr.bf16.mxu0 %v1197_v50  ;;  %1322 = vmatprep.subr.bf16.mxu1 %v1321_v39  ;;  %v102_v50 = vlaneseq  ;;  %v1327_v11 = vpack.c.bf16 %v373_v1, %v370_v63  ;;  %v374_v12 = vld [vmem:[#allocation7 + $0x330] sm:$0xff]  ;;  %v1329_v17 = vpack.c.bf16 %v427_v7, %v424_v6  ;;  %v376_v18 = vld [vmem:[#allocation7 + $0x340] sm:$0xff]  ;;  %v379_v19 = vld [vmem:[#allocation7 + $0x358] sm:$0xff] }
  0x76   :  { %v381_v20 = vld [vmem:[#allocation7 + $0x368] sm:$0xff]  ;;  %v430_v23 = vld [vmem:[#allocation7 + $0x4f0] sm:$0xff]  ;;  %v1235_v26 = vpack.c.bf16 %v377_v13, %v374_v12  ;;  %v383_v29 = vld [vmem:[#allocation7 + $0x378] sm:$0xff] }
  0x77   :  { %v1662_v51 = vshrl.u32 %v102_v50, 7  ;;  %v433_v24 = vld [vmem:[#allocation7 + $0x508] sm:$0xff]  ;;  %v382_v32 = vld [vmem:[#allocation7 + $0x370] sm:$0xff]  ;;  %v387_v34 = vld [vmem:[#allocation7 + $0x398] sm:$0xff] }
  0x78   :  { %1200 = vmatpush1.bf16.msra.mxu0 %v1199_v59  ;;  %1324 = vmatpush3.bf16.msra.mxu1 %v1323_v43  ;;  %v368_v59 = vld [vmem:[#allocation7 + $0x300] sm:$0xff]  ;;  %v385_v33 = vld [vmem:[#allocation7 + $0x388] sm:$0xff]  ;;  %v439_v37 = vld [vmem:[#allocation7 + $0x538] sm:$0xff] }
  0x79   :  { %1202 = vmatprep.subr.bf16.mxu0 %v1201_v60  ;;  %1326 = vmatprep.subr.bf16.mxu1 %v1325_v49  ;;  %v104_v52 = vsub.s32 0, %v1662_v51  ;;  %v108_v54 = vsub.s32 1, %v1662_v51  ;;  %v116_v56 = vsub.s32 3, %v1662_v51  ;;  %v371_v60 = vld [vmem:[#allocation7 + $0x318] sm:$0xff]  ;;  %v436_v36 = vld [vmem:[#allocation7 + $0x520] sm:$0xff]  ;;  %v1335_v39 = vpack.c.bf16 %v385_v33, %v382_v32  ;;  %v389_v41 = vld [vmem:[#allocation7 + $0x3a8] sm:$0xff] }
  0x7a   :  { %v1337_v43 = vpack.c.bf16 %v439_v37, %v436_v36  ;;  %v388_v44 = vld [vmem:[#allocation7 + $0x3a0] sm:$0xff]  ;;  %v391_v45 = vld [vmem:[#allocation7 + $0x3b8] sm:$0xff]  ;;  %v393_v46 = vld [vmem:[#allocation7 + $0x3c8] sm:$0xff] }
  0x7b   :  { %v105_v55 = vrot.slane %v1668_v53, %v104_v52  ;;  %v109_v57 = vrot.slane %v1668_v53, %v108_v54  ;;  %v442_v48 = vld [vmem:[#allocation7 + $0x550] sm:$0xff]  ;;  %v445_v49 = vld [vmem:[#allocation7 + $0x568] sm:$0xff]  ;;  %v448_v1 = vld [vmem:[#allocation7 + $0x580] sm:$0xff] }
  0x7c   :  { %1204 = vmatpush1.bf16.msra.mxu0 %v1203_v3  ;;  %v117_v3 = vrot.slane %v1668_v53, %v116_v56  ;;  %v392_v56 = vld [vmem:[#allocation7 + $0x3c0] sm:$0xff]  ;;  %v402_v63 = vld [vmem:[#allocation7 + $0x410] sm:$0xff]  ;;  %v401_v6 = vld [vmem:[#allocation7 + $0x408] sm:$0xff] }
  0x7d   :  { %1206 = vmatprep.subr.bf16.mxu0 %v1205_v4  ;;  %v405_v12 = vld [vmem:[#allocation7 + $0x428] sm:$0xff]  ;;  %v408_v13 = vld [vmem:[#allocation7 + $0x440] sm:$0xff]  ;;  %v410_v32 = vld [vmem:[#allocation7 + $0x450] sm:$0xff] }
  0x7e   :  { %v412_v36 = vld [vmem:[#allocation7 + $0x460] sm:$0xff]  ;;  %v415_v37 = vld [vmem:[#allocation7 + $0x478] sm:$0xff] }
  0x80   :  { %1208 = vmatpush1.bf16.msra.mxu0 %v1207_v9 }
  0x81   :  { %1210 = vmatprep.subr.bf16.mxu0 %v1209_v10  ;;  %v1231_v10 = vpack.c.bf16 %v371_v60, %v368_v59  ;;  %v1341_v59 = vpack.c.bf16 %v445_v49, %v442_v48  ;;  %v394_v60 = vld [vmem:[#allocation7 + $0x3d0] sm:$0xff] }
  0x84   :  { %1212 = vmatpush1.bf16.msra.mxu0 %v1211_v15 }
  0x85   :  { %1214 = vmatprep.subr.bf16.mxu0 %v1213_v16  ;;  %v1233_v16 = vpack.c.bf16 %v378_v5, %v375_v2  ;;  %v451_v2 = vld [vmem:[#allocation7 + $0x598] sm:$0xff]  ;;  %v398_v5 = vld [vmem:[#allocation7 + $0x3f0] sm:$0xff] }
  0x88   :  { %1216 = vmatpush1.bf16.msra.mxu0 %v1215_v21 }
  0x89   :  { %1218 = vmatprep.subr.bf16.mxu0 %v1217_v22  ;;  %v384_v22 = vld [vmem:[#allocation7 + $0x380] sm:$0xff] }
  0x8a   :  { %v1237_v30 = vpack.c.bf16 %v384_v22, %v381_v20  ;;  %v407_v20 = vld [vmem:[#allocation7 + $0x438] sm:$0xff] }
  0x8c   :  { %1220 = vmatpush1.bf16.msra.mxu0 %v1219_v27  ;;  %v1331_v27 = vpack.c.bf16 %v379_v19, %v376_v18  ;;  %v404_v19 = vld [vmem:[#allocation7 + $0x420] sm:$0xff] }
  0x8d   :  { %1222 = vmatprep.subr.bf16.mxu0 %v1221_v28  ;;  %v380_v28 = vld [vmem:[#allocation7 + $0x360] sm:$0xff] }
  0x8e   :  { %v1239_v38 = vpack.c.bf16 %v383_v29, %v380_v28  ;;  %v463_v28 = vld [vmem:[#allocation7 + $0x5f8] sm:$0xff] }
  0x90   :  { %1224 = vmatpush1.bf16.msra.mxu0 %v1223_v31  ;;  %v1333_v31 = vpack.c.bf16 %v433_v24, %v430_v23  ;;  %v406_v23 = vld [vmem:[#allocation7 + $0x430] sm:$0xff]  ;;  %v409_v24 = vld [vmem:[#allocation7 + $0x448] sm:$0xff] }
  0x91   :  { %1226 = vmatprep.subr.bf16.mxu0 %v1225_v35  ;;  %v390_v35 = vld [vmem:[#allocation7 + $0x3b0] sm:$0xff] }
  0x92   :  { %v1241_v42 = vpack.c.bf16 %v390_v35, %v387_v34  ;;  %v413_v35 = vld [vmem:[#allocation7 + $0x468] sm:$0xff] }
  0x94   :  { %1228 = vmatpush1.bf16.msra.mxu0 %v1227_v40  ;;  %v386_v40 = vld [vmem:[#allocation7 + $0x390] sm:$0xff] }
  0x95   :  { %1230 = vmatprep.subr.bf16.mxu0 %v1229_v47  ;;  %v396_v47 = vld [vmem:[#allocation7 + $0x3e0] sm:$0xff]  ;;  %v1243_v50 = vpack.c.bf16 %v389_v41, %v386_v40  ;;  %v1355_v41 = vpack.c.bf16 %v415_v37, %v412_v36  ;;  %v784_v37 = vld [vmem:[#allocation8 + $0x90] sm:$0xff] }
 0x12a   :  { %v192_v58 = vpop.f32.mrb[0].mxu0 }
 0x12b   :  { %v193_v61 = vadd.f32 %v192_v58, %v105_v55  ;;  %v194_v62 = vpop.f32.mrb[1].mxu0  ;;  %v1339_v55 = vpack.c.bf16 %v391_v45, %v388_v44  ;;  %v1245_v58 = vpack.c.bf16 %v396_v47, %v393_v46  ;;  %v419_v44 = vld [vmem:[#allocation7 + $0x498] sm:$0xff]  ;;  %v426_v46 = vld [vmem:[#allocation7 + $0x4d0] sm:$0xff] }
 0x12c   :  { %v195_v4 = vadd.f32 %v194_v62, %v109_v57  ;;  %v1679_v8 = vpop.f32.mrb[0].mxu1  ;;  %v395_v57 = vld [vmem:[#allocation7 + $0x3d8] sm:$0xff] }
 0x12d   :  { %v265_v14 = vpop.f32.mrb[1].mxu1  ;;  %v268_v15 = vmax.f32 %v193_v61, 0.0  ;;  %v397_v61 = vld [vmem:[#allocation7 + $0x3e8] sm:$0xff]  ;;  %v399_v62 = vld [vmem:[#allocation7 + $0x3f8] sm:$0xff] }
 0x12e   :  { %v269_v9 = vmax.f32 %v195_v4, 0.0  ;;  %v266_v21 = vadd.f32 %v265_v14, %v117_v3  ;;  %v1247_v3 = vpack.c.bf16 %v395_v57, %v392_v56  ;;  %v1343_v4 = vpack.c.bf16 %v397_v61, %v394_v60  ;;  %v454_v14 = vld [vmem:[#allocation7 + $0x5b0] sm:$0xff]  ;;  %v423_v45 = vld [vmem:[#allocation7 + $0x4b8] sm:$0xff]  ;;  %v432_v56 = vld [vmem:[#allocation7 + $0x500] sm:$0xff] }
 0x12f   :  { %v1249_v7 = vpack.c.bf16 %v402_v63, %v399_v62  ;;  %v1265_v49 = vpack.c.bf16 %v426_v46, %v423_v45  ;;  %v431_v60 = vld [vmem:[#allocation7 + $0x4f8] sm:$0xff]  ;;  %v438_v62 = vld [vmem:[#allocation7 + $0x530] sm:$0xff]  ;;  %v770_v45 = vld [vmem:[#allocation8 + $0x20] sm:$0xff] }
 0x130   :  { %545 = vmatprep.mubr.f32.mxu0 %v269_v9  ;;  %687 = vmatprep.mubr.f32.mxu1 %v269_v9  ;;  %v271_v25 = vmax.f32 %v266_v21, 0.0  ;;  %v1345_v9 = vpack.c.bf16 %v451_v2, %v448_v1  ;;  %v1253_v21 = vpack.c.bf16 %v408_v13, %v405_v12  ;;  %v435_v61 = vld [vmem:[#allocation7 + $0x518] sm:$0xff]  ;;  %v434_v2 = vld [vmem:[#allocation7 + $0x510] sm:$0xff]  ;;  %v771_v46 = vld [vmem:[#allocation8 + $0x28] sm:$0xff] }
 0x131   :  { %546 = vmatmul.mubr.f32.vlgmr.msra.gmra.mrb[2].mxu0 %v268_v15  ;;  %688 = vmatmul.mubr.f32.vlgmr.msra.gmra.mrb[2].mxu1 %v268_v15  ;;  %v457_v15 = vld [vmem:[#allocation7 + $0x5c8] sm:$0xff]  ;;  %v1273_v1 = vpack.c.bf16 %v438_v62, %v435_v61  ;;  %v450_v12 = vld [vmem:[#allocation7 + $0x590] sm:$0xff] }
 0x132   :  { %1232 = vmatpush1.bf16.msra.mxu0 %v1231_v10  ;;  %1328 = vmatpush3.bf16.msra.mxu1 %v1327_v11  ;;  %v400_v10 = vld [vmem:[#allocation7 + $0x400] sm:$0xff]  ;;  %v403_v11 = vld [vmem:[#allocation7 + $0x418] sm:$0xff]  ;;  %v1349_v22 = vpack.c.bf16 %v457_v15, %v454_v14  ;;  %v446_v15 = vld [vmem:[#allocation7 + $0x570] sm:$0xff] }
 0x133   :  { %1234 = vmatprep.subr.bf16.mxu0 %v1233_v16  ;;  %1330 = vmatprep.subr.bf16.mxu1 %v1329_v17  ;;  %v112_v16 = vsub.s32 2, %v1662_v51  ;;  %v1251_v17 = vpack.c.bf16 %v401_v6, %v398_v5  ;;  %v1347_v18 = vpack.c.bf16 %v403_v11, %v400_v10  ;;  %v444_v5 = vld [vmem:[#allocation7 + $0x560] sm:$0xff]  ;;  %v443_v10 = vld [vmem:[#allocation7 + $0x558] sm:$0xff]  ;;  %v775_v61 = vld [vmem:[#allocation8 + $0x48] sm:$0xff] }
 0x134   :  { %757 = vmatprep.mubr.f32.mxu1 %v271_v25  ;;  %616 = vmatprep.mubr.f32.mxu0 %v271_v25  ;;  %v411_v25 = vld [vmem:[#allocation7 + $0x458] sm:$0xff]  ;;  %v792_v62 = vld [vmem:[#allocation8 + $0xd0] sm:$0xff]  ;;  %v802_v51 = vld [vmem:[#allocation8 + $0x120] sm:$0xff] }
 0x135   :  { %v113_v29 = vrot.slane %v1668_v53, %v112_v16  ;;  %v1259_v53 = vpack.c.bf16 %v413_v35, %v410_v32  ;;  %v447_v11 = vld [vmem:[#allocation7 + $0x578] sm:$0xff]  ;;  %v783_v32 = vld [vmem:[#allocation8 + $0x88] sm:$0xff] }
 0x136   :  { %1236 = vmatpush1.bf16.msra.mxu0 %v1235_v26  ;;  %1332 = vmatpush3.bf16.msra.mxu1 %v1331_v27  ;;  %v414_v26 = vld [vmem:[#allocation7 + $0x470] sm:$0xff]  ;;  %v460_v27 = vld [vmem:[#allocation7 + $0x5e0] sm:$0xff]  ;;  %v1281_v14 = vpack.c.bf16 %v450_v12, %v447_v11  ;;  %v767_v35 = vld [vmem:[#allocation8 + $0x8] sm:$0xff] }
 0x137   :  { %1238 = vmatprep.subr.bf16.mxu0 %v1237_v30  ;;  %1334 = vmatprep.subr.bf16.mxu1 %v1333_v31  ;;  %v1255_v30 = vpack.c.bf16 %v407_v20, %v404_v19  ;;  %v1351_v31 = vpack.c.bf16 %v409_v24, %v406_v23  ;;  %v1257_v33 = vpack.c.bf16 %v414_v26, %v411_v25  ;;  %v456_v19 = vld [vmem:[#allocation7 + $0x5c0] sm:$0xff]  ;;  %v455_v23 = vld [vmem:[#allocation7 + $0x5b8] sm:$0xff]  ;;  %v462_v25 = vld [vmem:[#allocation7 + $0x5f0] sm:$0xff] }
 0x138   :  { %v1353_v34 = vpack.c.bf16 %v463_v28, %v460_v27  ;;  %v1686_v40 = vadd.f32 %v1679_v8, %v113_v29  ;;  %v422_v8 = vld [vmem:[#allocation7 + $0x4b0] sm:$0xff]  ;;  %v459_v24 = vld [vmem:[#allocation7 + $0x5d8] sm:$0xff]  ;;  %v461_v29 = vld [vmem:[#allocation7 + $0x5e8] sm:$0xff] }
 0x139   :  { %v1289_v27 = vpack.c.bf16 %v462_v25, %v459_v24  ;;  %v458_v28 = vld [vmem:[#allocation7 + $0x5d0] sm:$0xff]  ;;  %v779_v11 = vld [vmem:[#allocation8 + $0x68] sm:$0xff]  ;;  %v464_v24 = vld [vmem:[%s1721_s4] sm:$0x7] }
 0x13a   :  { %1240 = vmatpush1.bf16.msra.mxu0 %v1239_v38  ;;  %1336 = vmatpush3.bf16.msra.mxu1 %v1335_v39  ;;  %v417_v38 = vld [vmem:[#allocation7 + $0x488] sm:$0xff]  ;;  %v420_v39 = vld [vmem:[#allocation7 + $0x4a0] sm:$0xff]  ;;  %v270_v47 = vmax.f32 %v1686_v40, 0.0  ;;  %v477_v25 = vrot.slane %v464_v24, %v112_v16 }
 0x13b   :  { %1242 = vmatprep.subr.bf16.mxu0 %v1241_v42  ;;  %1338 = vmatprep.subr.bf16.mxu1 %v1337_v43  ;;  %v1261_v42 = vpack.c.bf16 %v420_v39, %v417_v38  ;;  %v416_v43 = vld [vmem:[#allocation7 + $0x480] sm:$0xff]  ;;  %v785_v38 = vld [vmem:[#allocation8 + $0x98] sm:$0xff]  ;;  %v768_v39 = vld [vmem:[#allocation8 + $0x10] sm:$0xff] }
 0x13c   :  { %v1263_v48 = vpack.c.bf16 %v419_v44, %v416_v43  ;;  %v1361_v40 = vpack.c.bf16 %v785_v38, %v784_v37  ;;  %v799_v37 = vld [vmem:[#allocation8 + $0x108] sm:$0xff] }
 0x13e   :  { %1244 = vmatpush1.bf16.msra.mxu0 %v1243_v50  ;;  %1340 = vmatpush3.bf16.msra.mxu1 %v1339_v55  ;;  %v425_v50 = vld [vmem:[#allocation7 + $0x4c8] sm:$0xff] }
 0x13f   :  { %1246 = vmatprep.subr.bf16.mxu0 %v1245_v58  ;;  %1342 = vmatprep.subr.bf16.mxu1 %v1341_v59  ;;  %v429_v55 = vld [vmem:[#allocation7 + $0x4e8] sm:$0xff]  ;;  %v1267_v57 = vpack.c.bf16 %v425_v50, %v422_v8  ;;  %v428_v59 = vld [vmem:[#allocation7 + $0x4e0] sm:$0xff]  ;;  %v772_v50 = vld [vmem:[#allocation8 + $0x30] sm:$0xff] }
 0x140   :  { %v1269_v58 = vpack.c.bf16 %v432_v56, %v429_v55  ;;  %v1271_v63 = vpack.c.bf16 %v431_v60, %v428_v59  ;;  %v773_v55 = vld [vmem:[#allocation8 + $0x38] sm:$0xff]  ;;  %v790_v56 = vld [vmem:[#allocation8 + $0xc0] sm:$0xff] }
 0x141   :  { %v774_v60 = vld [vmem:[#allocation8 + $0x40] sm:$0xff] }
 0x142   :  { %1248 = vmatpush1.bf16.msra.mxu0 %v1247_v3  ;;  %1344 = vmatpush3.bf16.msra.mxu1 %v1343_v4  ;;  %v437_v3 = vld [vmem:[#allocation7 + $0x528] sm:$0xff] }
 0x143   :  { %1250 = vmatprep.subr.bf16.mxu0 %v1249_v7  ;;  %1346 = vmatprep.subr.bf16.mxu1 %v1345_v9  ;;  %v441_v4 = vld [vmem:[#allocation7 + $0x548] sm:$0xff]  ;;  %v1275_v6 = vpack.c.bf16 %v437_v3, %v434_v2  ;;  %v440_v9 = vld [vmem:[#allocation7 + $0x540] sm:$0xff]  ;;  %v776_v3 = vld [vmem:[#allocation8 + $0x50] sm:$0xff] }
 0x144   :  { %v1277_v7 = vpack.c.bf16 %v444_v5, %v441_v4  ;;  %v1279_v13 = vpack.c.bf16 %v443_v10, %v440_v9  ;;  %v777_v4 = vld [vmem:[#allocation8 + $0x58] sm:$0xff]  ;;  %v794_v5 = vld [vmem:[#allocation8 + $0xe0] sm:$0xff] }
 0x145   :  { %v778_v10 = vld [vmem:[#allocation8 + $0x60] sm:$0xff] }
 0x146   :  { %1252 = vmatpush1.bf16.msra.mxu0 %v1251_v17  ;;  %1348 = vmatpush3.bf16.msra.mxu1 %v1347_v18  ;;  %v449_v17 = vld [vmem:[#allocation7 + $0x588] sm:$0xff]  ;;  %v1383_v12 = vpack.c.bf16 %v779_v11, %v778_v10 }
 0x147   :  { %1254 = vmatprep.subr.bf16.mxu0 %v1253_v21  ;;  %1350 = vmatprep.subr.bf16.mxu1 %v1349_v22  ;;  %v453_v18 = vld [vmem:[#allocation7 + $0x5a8] sm:$0xff]  ;;  %v1283_v20 = vpack.c.bf16 %v449_v17, %v446_v15  ;;  %v452_v22 = vld [vmem:[#allocation7 + $0x5a0] sm:$0xff]  ;;  %v780_v17 = vld [vmem:[#allocation8 + $0x70] sm:$0xff] }
 0x148   :  { %v1285_v21 = vpack.c.bf16 %v456_v19, %v453_v18  ;;  %v1287_v26 = vpack.c.bf16 %v455_v23, %v452_v22  ;;  %v781_v18 = vld [vmem:[#allocation8 + $0x78] sm:$0xff] }
 0x149   :  { %v1387_v19 = vpack.c.bf16 %v781_v18, %v780_v17 }
 0x14a   :  { %1256 = vmatpush1.bf16.msra.mxu0 %v1255_v30  ;;  %1352 = vmatpush3.bf16.msra.mxu1 %v1351_v31  ;;  %v1291_v30 = vpack.c.bf16 %v461_v29, %v458_v28  ;;  %v782_v31 = vld [vmem:[#allocation8 + $0x80] sm:$0xff] }
 0x14b   :  { %1258 = vmatprep.subr.bf16.mxu0 %v1257_v33  ;;  %1354 = vmatprep.subr.bf16.mxu1 %v1353_v34  ;;  %v1357_v33 = vpack.c.bf16 %v783_v32, %v782_v31  ;;  %v766_v34 = vld [vmem:[#allocation8] sm:$0xff]  ;;  %v469_v31 = vrot.slane %v464_v24, %v104_v52  ;;  %v473_v32 = vrot.slane %v464_v24, %v108_v54  ;;  %v803_v52 = vld [vmem:[#allocation8 + $0x128] sm:$0xff] }
 0x14c   :  { %v1359_v36 = vpack.c.bf16 %v767_v35, %v766_v34  ;;  %v1396_v54 = vpack.c.bf16 %v803_v52, %v802_v51 }
 0x14e   :  { %1260 = vmatpush1.bf16.msra.mxu0 %v1259_v53  ;;  %1356 = vmatpush3.bf16.msra.mxu1 %v1355_v41  ;;  %v769_v53 = vld [vmem:[#allocation8 + $0x18] sm:$0xff]  ;;  %v786_v41 = vld [vmem:[#allocation8 + $0xa0] sm:$0xff] }
 0x14f   :  { %1262 = vmatprep.subr.bf16.mxu0 %v1261_v42  ;;  %1358 = vmatprep.subr.bf16.mxu1 %v1357_v33  ;;  %v787_v42 = vld [vmem:[#allocation8 + $0xa8] sm:$0xff]  ;;  %v1363_v43 = vpack.c.bf16 %v769_v53, %v768_v39  ;;  %v800_v53 = vld [vmem:[#allocation8 + $0x110] sm:$0xff] }
 0x150   :  { %v1365_v44 = vpack.c.bf16 %v787_v42, %v786_v41  ;;  %v801_v41 = vld [vmem:[#allocation8 + $0x118] sm:$0xff] }
 0x151   :  { %758 = vmatmul.mubr.f32.vlgmr.msra.gmra.mrb[4].mxu1 %v270_v47  ;;  %v1393_v42 = vpack.c.bf16 %v801_v41, %v800_v53 }
 0x152   :  { %1264 = vmatpush1.bf16.msra.mxu0 %v1263_v48  ;;  %1360 = vmatpush3.bf16.msra.mxu1 %v1359_v36  ;;  %v789_v48 = vld [vmem:[#allocation8 + $0xb8] sm:$0xff]  ;;  %v798_v36 = vld [vmem:[#allocation8 + $0x100] sm:$0xff] }
 0x153   :  { %1266 = vmatprep.subr.bf16.mxu0 %v1265_v49  ;;  %1362 = vmatprep.subr.bf16.mxu1 %v1361_v40  ;;  %v1367_v49 = vpack.c.bf16 %v771_v46, %v770_v45  ;;  %v1390_v40 = vpack.c.bf16 %v799_v37, %v798_v36  ;;  %v806_v46 = vld [vmem:[#allocation8 + $0x140] sm:$0xff] }
 0x156   :  { %1268 = vmatpush1.bf16.msra.mxu0 %v1267_v57  ;;  %1364 = vmatpush3.bf16.msra.mxu1 %v1363_v43  ;;  %v791_v57 = vld [vmem:[#allocation8 + $0xc8] sm:$0xff]  ;;  %v804_v43 = vld [vmem:[#allocation8 + $0x130] sm:$0xff] }
 0x157   :  { %1270 = vmatprep.subr.bf16.mxu0 %v1269_v58  ;;  %1366 = vmatprep.subr.bf16.mxu1 %v1365_v44  ;;  %v1371_v58 = vpack.c.bf16 %v773_v55, %v772_v50  ;;  %v1373_v59 = vpack.c.bf16 %v791_v57, %v790_v56  ;;  %v805_v44 = vld [vmem:[#allocation8 + $0x138] sm:$0xff]  ;;  %v810_v50 = vld [vmem:[#allocation8 + $0x160] sm:$0xff]  ;;  %v811_v55 = vld [vmem:[#allocation8 + $0x168] sm:$0xff] }
 0x158   :  { %v1399_v45 = vpack.c.bf16 %v805_v44, %v804_v43  ;;  %v1408_v56 = vpack.c.bf16 %v811_v55, %v810_v50  ;;  %v812_v57 = vld [vmem:[#allocation8 + $0x170] sm:$0xff] }
 0x15a   :  { %1272 = vmatpush1.bf16.msra.mxu0 %v1271_v63  ;;  %1368 = vmatpush3.bf16.msra.mxu1 %v1367_v49  ;;  %v793_v63 = vld [vmem:[#allocation8 + $0xd8] sm:$0xff]  ;;  %v808_v49 = vld [vmem:[#allocation8 + $0x150] sm:$0xff] }
 0x15b   :  { %1274 = vmatprep.subr.bf16.mxu0 %v1273_v1  ;;  %v1375_v1 = vpack.c.bf16 %v775_v61, %v774_v60  ;;  %v1377_v2 = vpack.c.bf16 %v793_v63, %v792_v62 }
 0x15e   :  { %1276 = vmatpush1.bf16.msra.mxu0 %v1275_v6  ;;  %v795_v6 = vld [vmem:[#allocation8 + $0xe8] sm:$0xff] }
 0x15f   :  { %1278 = vmatprep.subr.bf16.mxu0 %v1277_v7  ;;  %v1379_v7 = vpack.c.bf16 %v777_v4, %v776_v3  ;;  %v1381_v9 = vpack.c.bf16 %v795_v6, %v794_v5  ;;  %v991_v6 = vld [vmem:[%s1724_s7] ss:$0 sm:$0xff] }
 0x162   :  { %1280 = vmatpush1.bf16.msra.mxu0 %v1279_v13  ;;  %v796_v13 = vld [vmem:[#allocation8 + $0xf0] sm:$0xff] }
 0x163   :  { %1282 = vmatprep.subr.bf16.mxu0 %v1281_v14  ;;  %v797_v14 = vld [vmem:[#allocation8 + $0xf8] sm:$0xff] }
 0x164   :  { %v1385_v15 = vpack.c.bf16 %v797_v14, %v796_v13 }
 0x166   :  { %1284 = vmatpush1.bf16.msra.mxu0 %v1283_v20  ;;  %v1562_v20 = vmov 0.0|0.0  }
 0x167   :  { %1286 = vmatprep.subr.bf16.mxu0 %v1285_v21 }
 0x16a   :  { %1288 = vmatpush1.bf16.msra.mxu0 %v1287_v26 }
 0x16b   :  { %1290 = vmatprep.subr.bf16.mxu0 %v1289_v27 }
 0x16e   :  { %1292 = vmatpush1.bf16.msra.mxu0 %v1291_v30 }
 0x171   :  { %617 = vmatmul.mubr.f32.vlgmr.msra.gmra.mrb[2].mxu0 %v270_v47  ;;  %v788_v47 = vld [vmem:[#allocation8 + $0xb0] sm:$0xff] }
 0x172   :  { %v1369_v8 = vpack.c.bf16 %v789_v48, %v788_v47  ;;  %v807_v47 = vld [vmem:[#allocation8 + $0x148] sm:$0xff] }
 0x173   :  { %v1402_v48 = vpack.c.bf16 %v807_v47, %v806_v46 }
 0x174   :  { %1370 = vmatprep.subr.bf16.mxu1 %v1369_v8  ;;  %v809_v8 = vld [vmem:[#allocation8 + $0x158] sm:$0xff] }
 0x175   :  { %1372 = vmatpush3.bf16.msra.mxu1 %v1371_v58  ;;  %v813_v58 = vld [vmem:[#allocation8 + $0x178] sm:$0xff] }
 0x176   :  { %1374 = vmatprep.subr.bf16.mxu1 %v1373_v59  ;;  %v1411_v59 = vpack.c.bf16 %v813_v58, %v812_v57 }
 0x179   :  { %1376 = vmatpush3.bf16.msra.mxu1 %v1375_v1  ;;  %v990_v1 = vld [vmem:[%s1723_s6] ss:$0 sm:$0xff] }
 0x17a   :  { %1378 = vmatprep.subr.bf16.mxu1 %v1377_v2 }
 0x17d   :  { %1380 = vmatpush3.bf16.msra.mxu1 %v1379_v7 }
 0x17e   :  { %1382 = vmatprep.subr.bf16.mxu1 %v1381_v9 }
 0x181   :  { %1384 = vmatpush3.bf16.msra.mxu1 %v1383_v12 }
 0x182   :  { %1386 = vmatprep.subr.bf16.mxu1 %v1385_v15 }
 0x185   :  { %1388 = vmatpush3.bf16.msra.mxu1 %v1387_v19 }
 0x186   :  { %1389 = vmatprep.subr.bf16.mxu1 %v1562_v20 }
 0x204   :  { %v1024_v21 = vpop.f32.mrb[2].mxu1 }
 0x205   :  { %v1025_v22 = vpop.f32.mrb[3].mxu1 }
 0x206   :  { %v1026_v23 = vadd.f32 %v1025_v22, %v1024_v21 }
 0x208   :  { %v690_v28 = vadd.f32 %v1026_v23, %v477_v25 }
 0x224   :  { %v1059_v26 = vpop.f32.mrb[4].mxu1 }
 0x225   :  { %v1060_v27 = vpop.f32.mrb[5].mxu1 }
 0x226   :  { %v1061_v29 = vadd.f32 %v1060_v27, %v1059_v26 }
 0x228   :  { %v760_v30 = vadd.f32 %v1061_v29, %v690_v28 }
 0x22a   :  { %v765_v60 = vmax.f32 %v760_v30, 0.0 }
 0x244   :  { %v618_v33 = vpop.f32.mrb[2].mxu0 }
 0x245   :  { %v1413_v34 = vadd.f32 %v618_v33, %v469_v31  ;;  %v620_v35 = vpop.f32.mrb[3].mxu0 }
 0x246   :  { %v1414_v38 = vadd.f32 %v620_v35, %v473_v32 }
 0x247   :  { %v763_v16 = vmax.f32 %v1413_v34, 0.0 }
 0x248   :  { %v764_v39 = vmax.f32 %v1414_v38, 0.0 }
 0x24a   :  { %885 = vmatprep.mubr.f32.mxu1 %v764_v39 }
 0x24b   :  { %886 = vmatmul.mubr.f32.vlgmr.msra.gmra.mrb[6].mxu1 %v763_v16 }
 0x24c   :  { %1391 = vmatpush3.bf16.msra.mxu1 %v1390_v40  ;;  %1146 = vmatprep.mubr.msk.f32.mxu1 %vm1563_vm1, %v1561_v0  ;;  %v1405_v0 = vpack.c.bf16 %v809_v8, %v808_v49 }
 0x24d   :  { %1392 = vmatprep.subr.bf16.mxu1 %v1562_v20 }
 0x250   :  { %1394 = vmatpush3.bf16.msra.mxu1 %v1393_v42 }
 0x251   :  { %1395 = vmatprep.subr.bf16.mxu1 %v1562_v20 }
 0x254   :  { %1397 = vmatpush3.bf16.msra.mxu1 %v1396_v54 }
 0x255   :  { %1398 = vmatprep.subr.bf16.mxu1 %v1562_v20 }
 0x258   :  { %1400 = vmatpush3.bf16.msra.mxu1 %v1399_v45 }
 0x259   :  { %1401 = vmatprep.subr.bf16.mxu1 %v1562_v20 }
 0x25c   :  { %1403 = vmatpush3.bf16.msra.mxu1 %v1402_v48 }
 0x25d   :  { %1404 = vmatprep.subr.bf16.mxu1 %v1562_v20 }
 0x260   :  { %1406 = vmatpush3.bf16.msra.mxu1 %v1405_v0 }
 0x261   :  { %1407 = vmatprep.subr.bf16.mxu1 %v1562_v20 }
 0x264   :  { %1409 = vmatpush3.bf16.msra.mxu1 %v1408_v56 }
 0x265   :  { %1410 = vmatprep.subr.bf16.mxu1 %v1562_v20 }
 0x268   :  { %1412 = vmatpush3.bf16.msra.mxu1 %v1411_v59 }
 0x26b   :  { %1147 = vmatmul.mubr.f32.vlgmr.msra.gmra.mrb[8].mxu1 %v765_v60 }
 0x31e   :  { %v1094_v61 = vpop.f32.mrb[6].mxu1 }
 0x31f   :  { %v1095_v62 = vpop.f32.mrb[7].mxu1 }
 0x320   :  { %v1096_v63 = vadd.f32 %v1095_v62, %v1094_v61 }
 0x322   :  { %v888_v2 = vadd.f32 %v1096_v63, %v990_v1 }
 0x33e   :  { %v957_v3 = vpop.f32.mrb[8].mxu1 }
 0x33f   :  { %v958_v4 = vadd.f32 %v957_v3, %v888_v2  ;;  %v1148_v5 = vpop.f32.mrb[9].mxu1 }
 0x341   :  { %1431 = vtanh.f32 %v958_v4 }
 0x34b   :  { %v1432_v7 = vpop.eup %1431 }
 0x34c   :  { %v969_v9 = vmul.f32 %v1432_v7, %v991_v6 }
 0x34e   :  { %970 = vst [vmem:[#allocation10] sm:$0xff] %v969_v9 }
 0x34f   :  { %1532 = shalt.err (!%p1529_p8)
}
 0x350   :  { %s1533_s19 = scalar_lea.hbm %s1725_s8, 128 }
 0x351   :  { %p1534_p9 = scmp.ne.s32.totalorder %s1725_s8, %s1533_s19  ;;  %p1537_p10 = scmp.lt.u32.totalorder %s1533_s19, %s1725_s8 }
 0x353   :  { %p1539_p11 = pnand %p1537_p10, %p1534_p9 }
 0x355   :  { %1542 = shalt.err (!%p1539_p11)
}
 0x356   :  { %980 = dma.vmem_to_hbm [thread:$0]  %s978_s17, 128, %s1725_s8, [#allocation4]  }
 0x357   :  { %1549 = dma.done.wait [#allocation4], 128  }
 0x358   :  { %1550 = vsyncadd [#allocation4], 4294967168 }
 0x359   :  { %984 = vsyncpa [#allocation3], 1 }
 0x35a   :  { %985 = vsyncpa [#allocation6], 1 }
 0x35b   :  { %986 = vsyncpa [#allocation9], 1 }
 0x35c   :  { %987 = vsyncpa [#allocation4], 1 }

</bundles_post_ra>
